<compile_context>
chip_gen: v6e
topology: v6e:2x2x1
jax: 0.10.0
libtpu: 0.0.40
codegen_flags: <defaults>
</compile_context>

<pallas_src>
import functools

import jax
import jax.numpy as jnp
from jax.experimental import pallas as pl
from jax.experimental.pallas import tpu as pltpu


def _round_up(x, m):
    return ((x + m - 1) // m) * m


def _lstm_kernel(x_ref, wih_ref, whh_ref, b_ref, wout_ref, bout_ref,
                 out_ref, h_scr, c_scr, xp_scr, hist_scr,
                 *, t_chunk, batch_p, hidden, gate_w):
    TC, Bp, H, G = t_chunk, batch_p, hidden, gate_w
    cidx = pl.program_id(0)

    @pl.when(cidx == 0)
    def _():
        h_scr[...] = jnp.zeros_like(h_scr)
        c_scr[...] = jnp.zeros_like(c_scr)

    # ---- hoisted input projection: ONE (TC*Bp, idim) @ (idim, G) matmul,
    # off the serial dependence chain. Bias is folded in here. ----
    xp_scr[...] = (jnp.dot(x_ref[...], wih_ref[...],
                           preferred_element_type=jnp.float32)
                   + b_ref[...])

    # Hoisted lane mask: lanes >= H of h/c are padding and are pinned to 0.
    keep = jax.lax.broadcasted_iota(jnp.int32, (Bp, G), 1) < H

    h = h_scr[...]          # (Bp, G) carry, persists across chunks via scratch
    c = c_scr[...]

    # ---- sequential recurrence.  TC is a small static Python int, so the
    # loop is fully unrolled with static, tile-aligned slices.  Only
    # h @ W_hh^T (one 128x128 MXU tile) + the gate nonlinearities remain on
    # the serial dependence chain each step. ----
    for t in range(TC):
        # whh_ref[...] loaded per step (per-step live range; no giant hoist).
        gates = xp_scr[t * Bp:(t + 1) * Bp, :] + jnp.dot(
            h, whh_ref[...], preferred_element_type=jnp.float32)   # (Bp, G)

        # PyTorch gate packing i|f|g|o along the (single) 128-lane gate axis.
        # One sigmoid + one tanh over the full vreg, then XLU lane rotations
        # bring each gate's H lanes down to lanes [0:H).
        sig = jax.nn.sigmoid(gates)
        th = jnp.tanh(gates)
        i_g = sig                                        # lanes [0:H)   = i
        f_g = pltpu.roll(sig, shift=G - H, axis=1)       # lanes [H:2H)  -> [0:H)
        g_g = pltpu.roll(th, shift=G - 2 * H, axis=1)    # lanes [2H:3H) -> [0:H)
        o_g = pltpu.roll(sig, shift=G - 3 * H, axis=1)   # lanes [3H:4H) -> [0:H)

        c = jnp.where(keep, f_g * c + i_g * g_g, 0.0)    # padded lanes stay 0
        h = o_g * jnp.tanh(c)                            # -> padded lanes of h = 0

        # Aligned, full-tile snapshot of h (all Bp rows); the batch-row
        # selection for the head happens in the wrapper.
        hist_scr[t * Bp:(t + 1) * Bp, :] = h

    h_scr[...] = h
    c_scr[...] = c

    # ---- Linear + Sigmoid head ONCE per chunk over the whole history:
    # (1, G) x (TC*Bp, G)^T -> (1, TC*Bp), single store. ----
    logits = jax.lax.dot_general(
        wout_ref[...], hist_scr[...],
        dimension_numbers=(((1,), (1,)), ((), ())),
        preferred_element_type=jnp.float32)              # (1, TC*Bp)
    out_ref[0] = jax.nn.sigmoid(logits + bout_ref[0])


@functools.partial(jax.jit, static_argnames=("max_chunk",))
def lstm_net_pallas(x, w_ih, w_hh, b_ih, b_hh, w_out, b_out, *, max_chunk=32):
    """x: (T, B, idim) f32.  Weights in PyTorch convention:
       w_ih (4H, idim), w_hh (4H, H), b_ih/b_hh (4H,), w_out (1, H), b_out (1,).
       Returns (T, 1) f32 = Sigmoid(Linear(lstm_out[:, -1]))."""
    T, B, idim = x.shape
    H = w_hh.shape[1]
    G = _round_up(4 * H, 128)        # packed gate width (one lane tile for H=32)
    Bp = _round_up(B, 8)             # sublane-tile-aligned batch

    TC = min(T, max_chunk)           # timesteps per grid step
    Tp = _round_up(T, TC)            # padded sequence length
    n_chunks = Tp // TC

    f32 = jnp.float32
    # Pad batch to Bp (zero rows evolve as an LSTM over zero input: bounded,
    # never read) and time to Tp; flatten to (Tp*Bp, idim) so the per-chunk
    # x-projection is one matmul and every per-step slice is 8-row aligned.
    x_p = jnp.pad(x.astype(f32), ((0, Tp - T), (0, Bp - B), (0, 0)))
    x2d = x_p.reshape(Tp * Bp, idim)

    # Transposed weights in native i|f|g|o packing; zero-pad the h/contraction
    # dim and the gate dim up to G.  Zero padding is what keeps garbage lanes
    # of h/c out of the gates and out of the head.
    wih_t = jnp.pad(w_ih.astype(f32).T, ((0, 0), (0, G - 4 * H)))      # (idim, G)
    whh_t = jnp.pad(w_hh.astype(f32).T, ((0, G - H), (0, G - 4 * H)))  # (G, G)
    b = jnp.pad((b_ih + b_hh).astype(f32), (0, G - 4 * H)).reshape(1, G)
    wout_p = jnp.pad(w_out.astype(f32), ((0, 0), (0, G - H)))          # (1, G)
    bout = b_out.astype(f32).reshape(1)                                # SMEM

    kernel = functools.partial(_lstm_kernel, t_chunk=TC, batch_p=Bp,
                               hidden=H, gate_w=G)

    grid_spec = pltpu.PrefetchScalarGridSpec(
        num_scalar_prefetch=0,
        grid=(n_chunks,),
        in_specs=[
            pl.BlockSpec((TC * Bp, idim), lambda c: (c, 0)),        # x chunk
            pl.BlockSpec((idim, G), lambda c: (0, 0)),              # W_ih^T
            pl.BlockSpec((G, G), lambda c: (0, 0)),                 # W_hh^T
            pl.BlockSpec((1, G), lambda c: (0, 0)),                 # gate bias
            pl.BlockSpec((1, G), lambda c: (0, 0)),                 # W_out row
            pl.BlockSpec(memory_space=pltpu.MemorySpace.SMEM),      # b_out
        ],
        out_specs=pl.BlockSpec((1, 1, TC * Bp), lambda c: (c, 0, 0)),
        scratch_shapes=[
            pltpu.VMEM((Bp, G), jnp.float32),           # h carry
            pltpu.VMEM((Bp, G), jnp.float32),           # c carry
            pltpu.VMEM((TC * Bp, G), jnp.float32),      # hoisted x-projection
            pltpu.VMEM((TC * Bp, G), jnp.float32),      # per-step h history
        ],
    )

    out = pl.pallas_call(
        kernel,
        out_shape=jax.ShapeDtypeStruct((n_chunks, 1, TC * Bp), jnp.float32),
        grid_spec=grid_spec,
        compiler_params=pltpu.CompilerParams(
            dimension_semantics=("arbitrary",)),        # recurrence is sequential
    )(x2d, wih_t, whh_t, b, wout_p, bout)

    # out[c, 0, t*Bp + b] = head(h_t^{(b)}) for chunk c; pick batch row B-1,
    # drop time padding.
    y = out.reshape(n_chunks * TC, Bp)[:, B - 1]        # (Tp,)
    return y[:T].reshape(T, 1)


def lstm_net_ref(x, w_ih, w_hh, b_ih, b_hh, w_out, b_out):
    """Pure-JAX reference matching torch.nn.LSTM + Linear + Sigmoid."""
    T, B, _ = x.shape
    H = w_hh.shape[1]

    def step(carry, xt):
        h, c = carry
        gates = xt @ w_ih.T + b_ih + h @ w_hh.T + b_hh
        i, f, g, o = jnp.split(gates, 4, axis=-1)
        i = jax.nn.sigmoid(i)
        f = jax.nn.sigmoid(f)
        g = jnp.tanh(g)
        o = jax.nn.sigmoid(o)
        c = f * c + i * g
        h = o * jnp.tanh(c)
        return (h, c), h

    init = (jnp.zeros((B, H), jnp.float32), jnp.zeros((B, H), jnp.float32))
    _, ys = jax.lax.scan(step, init, x)          # ys: (T, B, H)
    h_last_batch = ys[:, -1]                     # (T, H)  == x[:, -1] in torch
    return jax.nn.sigmoid(h_last_batch @ w_out.T + b_out)   # (T, 1)


if __name__ == "__main__":
    T, B, IDIM, ODIM = 8, 2, 16, 32

    key = jax.random.PRNGKey(0)
    ks = jax.random.split(key, 8)
    bound = 1.0 / jnp.sqrt(ODIM)

    x = jax.random.normal(ks[0], (T, B, IDIM), dtype=jnp.float32)
    w_ih = jax.random.uniform(ks[1], (4 * ODIM, IDIM), minval=-bound, maxval=bound)
    w_hh = jax.random.uniform(ks[2], (4 * ODIM, ODIM), minval=-bound, maxval=bound)
    b_ih = jax.random.uniform(ks[3], (4 * ODIM,), minval=-bound, maxval=bound)
    b_hh = jax.random.uniform(ks[4], (4 * ODIM,), minval=-bound, maxval=bound)
    w_out = jax.random.uniform(ks[5], (1, ODIM), minval=-bound, maxval=bound)
    b_out = jax.random.uniform(ks[6], (1,), minval=-bound, maxval=bound)

    out = lstm_net_pallas(x, w_ih, w_hh, b_ih, b_hh, w_out, b_out)
    out = jax.block_until_ready(out)

    ref = lstm_net_ref(x, w_ih, w_hh, b_ih, b_hh, w_out, b_out)
    assert out.shape == (T, 1), out.shape
    assert jnp.allclose(out, ref, atol=1e-4, rtol=1e-4), (out, ref)

    print("KERNEL_OK")
</pallas_src>

<mosaic_0001>
module attributes {stable_mosaic.version = 11 : i64} {
  func.func @_lstm_kernel(%arg0: i32, %arg1: memref<64x16xf32, #tpu.memory_space<vmem>>, %arg2: memref<16x128xf32, #tpu.memory_space<vmem>>, %arg3: memref<128x128xf32, #tpu.memory_space<vmem>>, %arg4: memref<1x128xf32, #tpu.memory_space<vmem>>, %arg5: memref<1x128xf32, #tpu.memory_space<vmem>>, %arg6: memref<1xf32, #tpu.memory_space<smem>>, %arg7: memref<1x1x64xf32, #tpu.memory_space<vmem>>, %arg8: memref<8x128xf32, #tpu.memory_space<vmem>>, %arg9: memref<8x128xf32, #tpu.memory_space<vmem>>, %arg10: memref<64x128xf32, #tpu.memory_space<vmem>>, %arg11: memref<64x128xf32, #tpu.memory_space<vmem>>) attributes {dimension_semantics = [#tpu.dimension_semantics<arbitrary>], iteration_bounds = array<i64: 1>, scalar_prefetch = 0 : i64, scratch_operands = 4 : i64, tpu.core_type = #tpu.core_type<tc>, window_params = [{transform_indices = @transform_0, window_bounds = array<i64: 64, 16>}, {pipeline_mode = #tpu.pipeline_mode<synchronous>, transform_indices = @transform_1, window_bounds = array<i64: 16, 128>}, {pipeline_mode = #tpu.pipeline_mode<synchronous>, transform_indices = @transform_2, window_bounds = array<i64: 128, 128>}, {pipeline_mode = #tpu.pipeline_mode<synchronous>, transform_indices = @transform_3, window_bounds = array<i64: 1, 128>}, {pipeline_mode = #tpu.pipeline_mode<synchronous>, transform_indices = @transform_4, window_bounds = array<i64: 1, 128>}, {transform_indices = @transform_5, window_bounds = array<i64: 1>}, {transform_indices = @transform_6, window_bounds = array<i64: 1, 1, 64>}]} {
    %c0_i32 = arith.constant 0 : i32
    %0 = arith.cmpi eq, %arg0, %c0_i32 : i32
    %1 = arith.extui %0 : i1 to i32
    %c0_i32_0 = arith.constant 0 : i32
    %2 = arith.cmpi ne, %1, %c0_i32_0 : i32
    scf.if %2 {
      %cst_113 = arith.constant 0.000000e+00 : f32
      %199 = vector.broadcast %cst_113 : f32 to vector<8x128xf32>
      %c0_114 = arith.constant 0 : index
      %c0_115 = arith.constant 0 : index
      %200 = vector.load %arg8[%c0_114, %c0_115] : memref<8x128xf32, #tpu.memory_space<vmem>>, vector<8x128xf32>
      tpu.vector_store %arg8[%c0_114, %c0_115], %199 {strides = array<i32>} : memref<8x128xf32, #tpu.memory_space<vmem>>, vector<8x128xf32>,
      %cst_116 = arith.constant 0.000000e+00 : f32
      %201 = vector.broadcast %cst_116 : f32 to vector<8x128xf32>
      %c0_117 = arith.constant 0 : index
      %c0_118 = arith.constant 0 : index
      %202 = vector.load %arg9[%c0_117, %c0_118] : memref<8x128xf32, #tpu.memory_space<vmem>>, vector<8x128xf32>
      tpu.vector_store %arg9[%c0_117, %c0_118], %201 {strides = array<i32>} : memref<8x128xf32, #tpu.memory_space<vmem>>, vector<8x128xf32>,
    } else {
    }
    %c0 = arith.constant 0 : index
    %c0_1 = arith.constant 0 : index
    %3 = vector.load %arg1[%c0, %c0_1] : memref<64x16xf32, #tpu.memory_space<vmem>>, vector<64x16xf32>
    %c0_2 = arith.constant 0 : index
    %c0_3 = arith.constant 0 : index
    %4 = vector.load %arg2[%c0_2, %c0_3] : memref<16x128xf32, #tpu.memory_space<vmem>>, vector<16x128xf32>
    %cst = arith.constant dense<0.000000e+00> : vector<64x128xf32>
    %5 = tpu.matmul %3, %4, %cst {dimension_numbers = #tpu.dot_dimension_numbers<[1], [0], [0], [1], [0, 0, 1, 1], [], []>} : vector<64x16xf32>, vector<16x128xf32>, vector<64x128xf32> -> vector<64x128xf32>
    %c0_4 = arith.constant 0 : index
    %c0_5 = arith.constant 0 : index
    %6 = vector.load %arg4[%c0_4, %c0_5] : memref<1x128xf32, #tpu.memory_space<vmem>>, vector<1x128xf32>
    %7 = vector.broadcast %6 : vector<1x128xf32> to vector<64x128xf32>
    %8 = arith.addf %5, %7 : vector<64x128xf32>
    %c0_6 = arith.constant 0 : index
    %c0_7 = arith.constant 0 : index
    %9 = vector.load %arg10[%c0_6, %c0_7] : memref<64x128xf32, #tpu.memory_space<vmem>>, vector<64x128xf32>
    tpu.vector_store %arg10[%c0_6, %c0_7], %8 {strides = array<i32>} : memref<64x128xf32, #tpu.memory_space<vmem>>, vector<64x128xf32>,
    %10 = tpu.iota {dimensions = array<i32: 1>} : vector<8x128xi32>
    %c32_i32 = arith.constant 32 : i32
    %11 = vector.broadcast %c32_i32 : i32 to vector<8x128xi32>
    %12 = arith.cmpi slt, %10, %11 : vector<8x128xi32>
    %c0_8 = arith.constant 0 : index
    %c0_9 = arith.constant 0 : index
    %13 = vector.load %arg8[%c0_8, %c0_9] : memref<8x128xf32, #tpu.memory_space<vmem>>, vector<8x128xf32>
    %c0_10 = arith.constant 0 : index
    %c0_11 = arith.constant 0 : index
    %14 = vector.load %arg9[%c0_10, %c0_11] : memref<8x128xf32, #tpu.memory_space<vmem>>, vector<8x128xf32>
    %c0_12 = arith.constant 0 : index
    %c0_13 = arith.constant 0 : index
    %15 = vector.load %arg10[%c0_12, %c0_13] : memref<64x128xf32, #tpu.memory_space<vmem>>, vector<8x128xf32>
    %c0_14 = arith.constant 0 : index
    %c0_15 = arith.constant 0 : index
    %16 = vector.load %arg3[%c0_14, %c0_15] : memref<128x128xf32, #tpu.memory_space<vmem>>, vector<128x128xf32>
    %cst_16 = arith.constant dense<0.000000e+00> : vector<8x128xf32>
    %17 = tpu.matmul %13, %16, %cst_16 {dimension_numbers = #tpu.dot_dimension_numbers<[1], [0], [0], [1], [0, 0, 1, 1], [], []>} : vector<8x128xf32>, vector<128x128xf32>, vector<8x128xf32> -> vector<8x128xf32>
    %18 = arith.addf %15, %17 : vector<8x128xf32>
    %19 = arith.negf %18 : vector<8x128xf32>
    %20 = math.exp %19 : vector<8x128xf32>
    %cst_17 = arith.constant 1.000000e+00 : f32
    %21 = vector.broadcast %cst_17 : f32 to vector<8x128xf32>
    %22 = arith.addf %21, %20 : vector<8x128xf32>
    %23 = arith.divf %21, %22 : vector<8x128xf32>
    %24 = math.tanh %18 : vector<8x128xf32>
    %c96_i32 = arith.constant 96 : i32
    %25 = tpu.dynamic_rotate %23 by %c96_i32 dim 1 : vector<8x128xf32>, i32 -> vector<8x128xf32>
    %c64_i32 = arith.constant 64 : i32
    %26 = tpu.dynamic_rotate %24 by %c64_i32 dim 1 : vector<8x128xf32>, i32 -> vector<8x128xf32>
    %c32_i32_18 = arith.constant 32 : i32
    %27 = tpu.dynamic_rotate %23 by %c32_i32_18 dim 1 : vector<8x128xf32>, i32 -> vector<8x128xf32>
    %28 = arith.mulf %25, %14 : vector<8x128xf32>
    %29 = arith.mulf %23, %26 : vector<8x128xf32>
    %30 = arith.addf %28, %29 : vector<8x128xf32>
    %cst_19 = arith.constant 0.000000e+00 : f32
    %31 = vector.broadcast %cst_19 : f32 to vector<8x128xf32>
    %32 = arith.select %12, %30, %31 : vector<8x128xi1>, vector<8x128xf32>
    %33 = math.tanh %32 : vector<8x128xf32>
    %34 = arith.mulf %27, %33 : vector<8x128xf32>
    %c0_20 = arith.constant 0 : index
    %c0_21 = arith.constant 0 : index
    %35 = vector.load %arg11[%c0_20, %c0_21] : memref<64x128xf32, #tpu.memory_space<vmem>>, vector<8x128xf32>
    tpu.vector_store %arg11[%c0_20, %c0_21], %34 {strides = array<i32>} : memref<64x128xf32, #tpu.memory_space<vmem>>, vector<8x128xf32>,
    %c8 = arith.constant 8 : index
    %c0_22 = arith.constant 0 : index
    %36 = vector.load %arg10[%c8, %c0_22] : memref<64x128xf32, #tpu.memory_space<vmem>>, vector<8x128xf32>
    %c0_23 = arith.constant 0 : index
    %c0_24 = arith.constant 0 : index
    %37 = vector.load %arg3[%c0_23, %c0_24] : memref<128x128xf32, #tpu.memory_space<vmem>>, vector<128x128xf32>
    %cst_25 = arith.constant dense<0.000000e+00> : vector<8x128xf32>
    %38 = tpu.matmul %34, %37, %cst_25 {dimension_numbers = #tpu.dot_dimension_numbers<[1], [0], [0], [1], [0, 0, 1, 1], [], []>} : vector<8x128xf32>, vector<128x128xf32>, vector<8x128xf32> -> vector<8x128xf32>
    %39 = arith.addf %36, %38 : vector<8x128xf32>
    %40 = arith.negf %39 : vector<8x128xf32>
    %41 = math.exp %40 : vector<8x128xf32>
    %cst_26 = arith.constant 1.000000e+00 : f32
    %42 = vector.broadcast %cst_26 : f32 to vector<8x128xf32>
    %43 = arith.addf %42, %41 : vector<8x128xf32>
    %44 = arith.divf %42, %43 : vector<8x128xf32>
    %45 = math.tanh %39 : vector<8x128xf32>
    %c96_i32_27 = arith.constant 96 : i32
    %46 = tpu.dynamic_rotate %44 by %c96_i32_27 dim 1 : vector<8x128xf32>, i32 -> vector<8x128xf32>
    %c64_i32_28 = arith.constant 64 : i32
    %47 = tpu.dynamic_rotate %45 by %c64_i32_28 dim 1 : vector<8x128xf32>, i32 -> vector<8x128xf32>
    %c32_i32_29 = arith.constant 32 : i32
    %48 = tpu.dynamic_rotate %44 by %c32_i32_29 dim 1 : vector<8x128xf32>, i32 -> vector<8x128xf32>
    %49 = arith.mulf %46, %32 : vector<8x128xf32>
    %50 = arith.mulf %44, %47 : vector<8x128xf32>
    %51 = arith.addf %49, %50 : vector<8x128xf32>
    %cst_30 = arith.constant 0.000000e+00 : f32
    %52 = vector.broadcast %cst_30 : f32 to vector<8x128xf32>
    %53 = arith.select %12, %51, %52 : vector<8x128xi1>, vector<8x128xf32>
    %54 = math.tanh %53 : vector<8x128xf32>
    %55 = arith.mulf %48, %54 : vector<8x128xf32>
    %c8_31 = arith.constant 8 : index
    %c0_32 = arith.constant 0 : index
    %56 = vector.load %arg11[%c8_31, %c0_32] : memref<64x128xf32, #tpu.memory_space<vmem>>, vector<8x128xf32>
    tpu.vector_store %arg11[%c8_31, %c0_32], %55 {strides = array<i32>} : memref<64x128xf32, #tpu.memory_space<vmem>>, vector<8x128xf32>,
    %c16 = arith.constant 16 : index
    %c0_33 = arith.constant 0 : index
    %57 = vector.load %arg10[%c16, %c0_33] : memref<64x128xf32, #tpu.memory_space<vmem>>, vector<8x128xf32>
    %c0_34 = arith.constant 0 : index
    %c0_35 = arith.constant 0 : index
    %58 = vector.load %arg3[%c0_34, %c0_35] : memref<128x128xf32, #tpu.memory_space<vmem>>, vector<128x128xf32>
    %cst_36 = arith.constant dense<0.000000e+00> : vector<8x128xf32>
    %59 = tpu.matmul %55, %58, %cst_36 {dimension_numbers = #tpu.dot_dimension_numbers<[1], [0], [0], [1], [0, 0, 1, 1], [], []>} : vector<8x128xf32>, vector<128x128xf32>, vector<8x128xf32> -> vector<8x128xf32>
    %60 = arith.addf %57, %59 : vector<8x128xf32>
    %61 = arith.negf %60 : vector<8x128xf32>
    %62 = math.exp %61 : vector<8x128xf32>
    %cst_37 = arith.constant 1.000000e+00 : f32
    %63 = vector.broadcast %cst_37 : f32 to vector<8x128xf32>
    %64 = arith.addf %63, %62 : vector<8x128xf32>
    %65 = arith.divf %63, %64 : vector<8x128xf32>
    %66 = math.tanh %60 : vector<8x128xf32>
    %c96_i32_38 = arith.constant 96 : i32
    %67 = tpu.dynamic_rotate %65 by %c96_i32_38 dim 1 : vector<8x128xf32>, i32 -> vector<8x128xf32>
    %c64_i32_39 = arith.constant 64 : i32
    %68 = tpu.dynamic_rotate %66 by %c64_i32_39 dim 1 : vector<8x128xf32>, i32 -> vector<8x128xf32>
    %c32_i32_40 = arith.constant 32 : i32
    %69 = tpu.dynamic_rotate %65 by %c32_i32_40 dim 1 : vector<8x128xf32>, i32 -> vector<8x128xf32>
    %70 = arith.mulf %67, %53 : vector<8x128xf32>
    %71 = arith.mulf %65, %68 : vector<8x128xf32>
    %72 = arith.addf %70, %71 : vector<8x128xf32>
    %cst_41 = arith.constant 0.000000e+00 : f32
    %73 = vector.broadcast %cst_41 : f32 to vector<8x128xf32>
    %74 = arith.select %12, %72, %73 : vector<8x128xi1>, vector<8x128xf32>
    %75 = math.tanh %74 : vector<8x128xf32>
    %76 = arith.mulf %69, %75 : vector<8x128xf32>
    %c16_42 = arith.constant 16 : index
    %c0_43 = arith.constant 0 : index
    %77 = vector.load %arg11[%c16_42, %c0_43] : memref<64x128xf32, #tpu.memory_space<vmem>>, vector<8x128xf32>
    tpu.vector_store %arg11[%c16_42, %c0_43], %76 {strides = array<i32>} : memref<64x128xf32, #tpu.memory_space<vmem>>, vector<8x128xf32>,
    %c24 = arith.constant 24 : index
    %c0_44 = arith.constant 0 : index
    %78 = vector.load %arg10[%c24, %c0_44] : memref<64x128xf32, #tpu.memory_space<vmem>>, vector<8x128xf32>
    %c0_45 = arith.constant 0 : index
    %c0_46 = arith.constant 0 : index
    %79 = vector.load %arg3[%c0_45, %c0_46] : memref<128x128xf32, #tpu.memory_space<vmem>>, vector<128x128xf32>
    %cst_47 = arith.constant dense<0.000000e+00> : vector<8x128xf32>
    %80 = tpu.matmul %76, %79, %cst_47 {dimension_numbers = #tpu.dot_dimension_numbers<[1], [0], [0], [1], [0, 0, 1, 1], [], []>} : vector<8x128xf32>, vector<128x128xf32>, vector<8x128xf32> -> vector<8x128xf32>
    %81 = arith.addf %78, %80 : vector<8x128xf32>
    %82 = arith.negf %81 : vector<8x128xf32>
    %83 = math.exp %82 : vector<8x128xf32>
    %cst_48 = arith.constant 1.000000e+00 : f32
    %84 = vector.broadcast %cst_48 : f32 to vector<8x128xf32>
    %85 = arith.addf %84, %83 : vector<8x128xf32>
    %86 = arith.divf %84, %85 : vector<8x128xf32>
    %87 = math.tanh %81 : vector<8x128xf32>
    %c96_i32_49 = arith.constant 96 : i32
    %88 = tpu.dynamic_rotate %86 by %c96_i32_49 dim 1 : vector<8x128xf32>, i32 -> vector<8x128xf32>
    %c64_i32_50 = arith.constant 64 : i32
    %89 = tpu.dynamic_rotate %87 by %c64_i32_50 dim 1 : vector<8x128xf32>, i32 -> vector<8x128xf32>
    %c32_i32_51 = arith.constant 32 : i32
    %90 = tpu.dynamic_rotate %86 by %c32_i32_51 dim 1 : vector<8x128xf32>, i32 -> vector<8x128xf32>
    %91 = arith.mulf %88, %74 : vector<8x128xf32>
    %92 = arith.mulf %86, %89 : vector<8x128xf32>
    %93 = arith.addf %91, %92 : vector<8x128xf32>
    %cst_52 = arith.constant 0.000000e+00 : f32
    %94 = vector.broadcast %cst_52 : f32 to vector<8x128xf32>
    %95 = arith.select %12, %93, %94 : vector<8x128xi1>, vector<8x128xf32>
    %96 = math.tanh %95 : vector<8x128xf32>
    %97 = arith.mulf %90, %96 : vector<8x128xf32>
    %c24_53 = arith.constant 24 : index
    %c0_54 = arith.constant 0 : index
    %98 = vector.load %arg11[%c24_53, %c0_54] : memref<64x128xf32, #tpu.memory_space<vmem>>, vector<8x128xf32>
    tpu.vector_store %arg11[%c24_53, %c0_54], %97 {strides = array<i32>} : memref<64x128xf32, #tpu.memory_space<vmem>>, vector<8x128xf32>,
    %c32 = arith.constant 32 : index
    %c0_55 = arith.constant 0 : index
    %99 = vector.load %arg10[%c32, %c0_55] : memref<64x128xf32, #tpu.memory_space<vmem>>, vector<8x128xf32>
    %c0_56 = arith.constant 0 : index
    %c0_57 = arith.constant 0 : index
    %100 = vector.load %arg3[%c0_56, %c0_57] : memref<128x128xf32, #tpu.memory_space<vmem>>, vector<128x128xf32>
    %cst_58 = arith.constant dense<0.000000e+00> : vector<8x128xf32>
    %101 = tpu.matmul %97, %100, %cst_58 {dimension_numbers = #tpu.dot_dimension_numbers<[1], [0], [0], [1], [0, 0, 1, 1], [], []>} : vector<8x128xf32>, vector<128x128xf32>, vector<8x128xf32> -> vector<8x128xf32>
    %102 = arith.addf %99, %101 : vector<8x128xf32>
    %103 = arith.negf %102 : vector<8x128xf32>
    %104 = math.exp %103 : vector<8x128xf32>
    %cst_59 = arith.constant 1.000000e+00 : f32
    %105 = vector.broadcast %cst_59 : f32 to vector<8x128xf32>
    %106 = arith.addf %105, %104 : vector<8x128xf32>
    %107 = arith.divf %105, %106 : vector<8x128xf32>
    %108 = math.tanh %102 : vector<8x128xf32>
    %c96_i32_60 = arith.constant 96 : i32
    %109 = tpu.dynamic_rotate %107 by %c96_i32_60 dim 1 : vector<8x128xf32>, i32 -> vector<8x128xf32>
    %c64_i32_61 = arith.constant 64 : i32
    %110 = tpu.dynamic_rotate %108 by %c64_i32_61 dim 1 : vector<8x128xf32>, i32 -> vector<8x128xf32>
    %c32_i32_62 = arith.constant 32 : i32
    %111 = tpu.dynamic_rotate %107 by %c32_i32_62 dim 1 : vector<8x128xf32>, i32 -> vector<8x128xf32>
    %112 = arith.mulf %109, %95 : vector<8x128xf32>
    %113 = arith.mulf %107, %110 : vector<8x128xf32>
    %114 = arith.addf %112, %113 : vector<8x128xf32>
    %cst_63 = arith.constant 0.000000e+00 : f32
    %115 = vector.broadcast %cst_63 : f32 to vector<8x128xf32>
    %116 = arith.select %12, %114, %115 : vector<8x128xi1>, vector<8x128xf32>
    %117 = math.tanh %116 : vector<8x128xf32>
    %118 = arith.mulf %111, %117 : vector<8x128xf32>
    %c32_64 = arith.constant 32 : index
    %c0_65 = arith.constant 0 : index
    %119 = vector.load %arg11[%c32_64, %c0_65] : memref<64x128xf32, #tpu.memory_space<vmem>>, vector<8x128xf32>
    tpu.vector_store %arg11[%c32_64, %c0_65], %118 {strides = array<i32>} : memref<64x128xf32, #tpu.memory_space<vmem>>, vector<8x128xf32>,
    %c40 = arith.constant 40 : index
    %c0_66 = arith.constant 0 : index
    %120 = vector.load %arg10[%c40, %c0_66] : memref<64x128xf32, #tpu.memory_space<vmem>>, vector<8x128xf32>
    %c0_67 = arith.constant 0 : index
    %c0_68 = arith.constant 0 : index
    %121 = vector.load %arg3[%c0_67, %c0_68] : memref<128x128xf32, #tpu.memory_space<vmem>>, vector<128x128xf32>
    %cst_69 = arith.constant dense<0.000000e+00> : vector<8x128xf32>
    %122 = tpu.matmul %118, %121, %cst_69 {dimension_numbers = #tpu.dot_dimension_numbers<[1], [0], [0], [1], [0, 0, 1, 1], [], []>} : vector<8x128xf32>, vector<128x128xf32>, vector<8x128xf32> -> vector<8x128xf32>
    %123 = arith.addf %120, %122 : vector<8x128xf32>
    %124 = arith.negf %123 : vector<8x128xf32>
    %125 = math.exp %124 : vector<8x128xf32>
    %cst_70 = arith.constant 1.000000e+00 : f32
    %126 = vector.broadcast %cst_70 : f32 to vector<8x128xf32>
    %127 = arith.addf %126, %125 : vector<8x128xf32>
    %128 = arith.divf %126, %127 : vector<8x128xf32>
    %129 = math.tanh %123 : vector<8x128xf32>
    %c96_i32_71 = arith.constant 96 : i32
    %130 = tpu.dynamic_rotate %128 by %c96_i32_71 dim 1 : vector<8x128xf32>, i32 -> vector<8x128xf32>
    %c64_i32_72 = arith.constant 64 : i32
    %131 = tpu.dynamic_rotate %129 by %c64_i32_72 dim 1 : vector<8x128xf32>, i32 -> vector<8x128xf32>
    %c32_i32_73 = arith.constant 32 : i32
    %132 = tpu.dynamic_rotate %128 by %c32_i32_73 dim 1 : vector<8x128xf32>, i32 -> vector<8x128xf32>
    %133 = arith.mulf %130, %116 : vector<8x128xf32>
    %134 = arith.mulf %128, %131 : vector<8x128xf32>
    %135 = arith.addf %133, %134 : vector<8x128xf32>
    %cst_74 = arith.constant 0.000000e+00 : f32
    %136 = vector.broadcast %cst_74 : f32 to vector<8x128xf32>
    %137 = arith.select %12, %135, %136 : vector<8x128xi1>, vector<8x128xf32>
    %138 = math.tanh %137 : vector<8x128xf32>
    %139 = arith.mulf %132, %138 : vector<8x128xf32>
    %c40_75 = arith.constant 40 : index
    %c0_76 = arith.constant 0 : index
    %140 = vector.load %arg11[%c40_75, %c0_76] : memref<64x128xf32, #tpu.memory_space<vmem>>, vector<8x128xf32>
    tpu.vector_store %arg11[%c40_75, %c0_76], %139 {strides = array<i32>} : memref<64x128xf32, #tpu.memory_space<vmem>>, vector<8x128xf32>,
    %c48 = arith.constant 48 : index
    %c0_77 = arith.constant 0 : index
    %141 = vector.load %arg10[%c48, %c0_77] : memref<64x128xf32, #tpu.memory_space<vmem>>, vector<8x128xf32>
    %c0_78 = arith.constant 0 : index
    %c0_79 = arith.constant 0 : index
    %142 = vector.load %arg3[%c0_78, %c0_79] : memref<128x128xf32, #tpu.memory_space<vmem>>, vector<128x128xf32>
    %cst_80 = arith.constant dense<0.000000e+00> : vector<8x128xf32>
    %143 = tpu.matmul %139, %142, %cst_80 {dimension_numbers = #tpu.dot_dimension_numbers<[1], [0], [0], [1], [0, 0, 1, 1], [], []>} : vector<8x128xf32>, vector<128x128xf32>, vector<8x128xf32> -> vector<8x128xf32>
    %144 = arith.addf %141, %143 : vector<8x128xf32>
    %145 = arith.negf %144 : vector<8x128xf32>
    %146 = math.exp %145 : vector<8x128xf32>
    %cst_81 = arith.constant 1.000000e+00 : f32
    %147 = vector.broadcast %cst_81 : f32 to vector<8x128xf32>
    %148 = arith.addf %147, %146 : vector<8x128xf32>
    %149 = arith.divf %147, %148 : vector<8x128xf32>
    %150 = math.tanh %144 : vector<8x128xf32>
    %c96_i32_82 = arith.constant 96 : i32
    %151 = tpu.dynamic_rotate %149 by %c96_i32_82 dim 1 : vector<8x128xf32>, i32 -> vector<8x128xf32>
    %c64_i32_83 = arith.constant 64 : i32
    %152 = tpu.dynamic_rotate %150 by %c64_i32_83 dim 1 : vector<8x128xf32>, i32 -> vector<8x128xf32>
    %c32_i32_84 = arith.constant 32 : i32
    %153 = tpu.dynamic_rotate %149 by %c32_i32_84 dim 1 : vector<8x128xf32>, i32 -> vector<8x128xf32>
    %154 = arith.mulf %151, %137 : vector<8x128xf32>
    %155 = arith.mulf %149, %152 : vector<8x128xf32>
    %156 = arith.addf %154, %155 : vector<8x128xf32>
    %cst_85 = arith.constant 0.000000e+00 : f32
    %157 = vector.broadcast %cst_85 : f32 to vector<8x128xf32>
    %158 = arith.select %12, %156, %157 : vector<8x128xi1>, vector<8x128xf32>
    %159 = math.tanh %158 : vector<8x128xf32>
    %160 = arith.mulf %153, %159 : vector<8x128xf32>
    %c48_86 = arith.constant 48 : index
    %c0_87 = arith.constant 0 : index
    %161 = vector.load %arg11[%c48_86, %c0_87] : memref<64x128xf32, #tpu.memory_space<vmem>>, vector<8x128xf32>
    tpu.vector_store %arg11[%c48_86, %c0_87], %160 {strides = array<i32>} : memref<64x128xf32, #tpu.memory_space<vmem>>, vector<8x128xf32>,
    %c56 = arith.constant 56 : index
    %c0_88 = arith.constant 0 : index
    %162 = vector.load %arg10[%c56, %c0_88] : memref<64x128xf32, #tpu.memory_space<vmem>>, vector<8x128xf32>
    %c0_89 = arith.constant 0 : index
    %c0_90 = arith.constant 0 : index
    %163 = vector.load %arg3[%c0_89, %c0_90] : memref<128x128xf32, #tpu.memory_space<vmem>>, vector<128x128xf32>
    %cst_91 = arith.constant dense<0.000000e+00> : vector<8x128xf32>
    %164 = tpu.matmul %160, %163, %cst_91 {dimension_numbers = #tpu.dot_dimension_numbers<[1], [0], [0], [1], [0, 0, 1, 1], [], []>} : vector<8x128xf32>, vector<128x128xf32>, vector<8x128xf32> -> vector<8x128xf32>
    %165 = arith.addf %162, %164 : vector<8x128xf32>
    %166 = arith.negf %165 : vector<8x128xf32>
    %167 = math.exp %166 : vector<8x128xf32>
    %cst_92 = arith.constant 1.000000e+00 : f32
    %168 = vector.broadcast %cst_92 : f32 to vector<8x128xf32>
    %169 = arith.addf %168, %167 : vector<8x128xf32>
    %170 = arith.divf %168, %169 : vector<8x128xf32>
    %171 = math.tanh %165 : vector<8x128xf32>
    %c96_i32_93 = arith.constant 96 : i32
    %172 = tpu.dynamic_rotate %170 by %c96_i32_93 dim 1 : vector<8x128xf32>, i32 -> vector<8x128xf32>
    %c64_i32_94 = arith.constant 64 : i32
    %173 = tpu.dynamic_rotate %171 by %c64_i32_94 dim 1 : vector<8x128xf32>, i32 -> vector<8x128xf32>
    %c32_i32_95 = arith.constant 32 : i32
    %174 = tpu.dynamic_rotate %170 by %c32_i32_95 dim 1 : vector<8x128xf32>, i32 -> vector<8x128xf32>
    %175 = arith.mulf %172, %158 : vector<8x128xf32>
    %176 = arith.mulf %170, %173 : vector<8x128xf32>
    %177 = arith.addf %175, %176 : vector<8x128xf32>
    %cst_96 = arith.constant 0.000000e+00 : f32
    %178 = vector.broadcast %cst_96 : f32 to vector<8x128xf32>
    %179 = arith.select %12, %177, %178 : vector<8x128xi1>, vector<8x128xf32>
    %180 = math.tanh %179 : vector<8x128xf32>
    %181 = arith.mulf %174, %180 : vector<8x128xf32>
    %c56_97 = arith.constant 56 : index
    %c0_98 = arith.constant 0 : index
    %182 = vector.load %arg11[%c56_97, %c0_98] : memref<64x128xf32, #tpu.memory_space<vmem>>, vector<8x128xf32>
    tpu.vector_store %arg11[%c56_97, %c0_98], %181 {strides = array<i32>} : memref<64x128xf32, #tpu.memory_space<vmem>>, vector<8x128xf32>,
    %c0_99 = arith.constant 0 : index
    %c0_100 = arith.constant 0 : index
    %183 = vector.load %arg8[%c0_99, %c0_100] : memref<8x128xf32, #tpu.memory_space<vmem>>, vector<8x128xf32>
    tpu.vector_store %arg8[%c0_99, %c0_100], %181 {strides = array<i32>} : memref<8x128xf32, #tpu.memory_space<vmem>>, vector<8x128xf32>,
    %c0_101 = arith.constant 0 : index
    %c0_102 = arith.constant 0 : index
    %184 = vector.load %arg9[%c0_101, %c0_102] : memref<8x128xf32, #tpu.memory_space<vmem>>, vector<8x128xf32>
    tpu.vector_store %arg9[%c0_101, %c0_102], %179 {strides = array<i32>} : memref<8x128xf32, #tpu.memory_space<vmem>>, vector<8x128xf32>,
    %c0_103 = arith.constant 0 : index
    %c0_104 = arith.constant 0 : index
    %185 = vector.load %arg5[%c0_103, %c0_104] : memref<1x128xf32, #tpu.memory_space<vmem>>, vector<1x128xf32>
    %c0_105 = arith.constant 0 : index
    %c0_106 = arith.constant 0 : index
    %186 = vector.load %arg11[%c0_105, %c0_106] : memref<64x128xf32, #tpu.memory_space<vmem>>, vector<64x128xf32>
    %cst_107 = arith.constant dense<0.000000e+00> : vector<1x64xf32>
    %187 = tpu.matmul %185, %186, %cst_107 {dimension_numbers = #tpu.dot_dimension_numbers<[1], [1], [0], [0], [0, 0, 1, 0], [], []>} : vector<1x128xf32>, vector<64x128xf32>, vector<1x64xf32> -> vector<1x64xf32>
    %c0_108 = arith.constant 0 : index
    %188 = memref.load %arg6[%c0_108] : memref<1xf32, #tpu.memory_space<smem>>
    %189 = vector.broadcast %188 : f32 to vector<1x64xf32>
    %190 = arith.addf %187, %189 : vector<1x64xf32>
    %191 = arith.negf %190 : vector<1x64xf32>
    %192 = math.exp %191 : vector<1x64xf32>
    %cst_109 = arith.constant 1.000000e+00 : f32
    %193 = vector.broadcast %cst_109 : f32 to vector<1x64xf32>
    %194 = arith.addf %193, %192 : vector<1x64xf32>
    %195 = arith.divf %193, %194 : vector<1x64xf32>
    %c0_110 = arith.constant 0 : index
    %c0_111 = arith.constant 0 : index
    %c0_112 = arith.constant 0 : index
    %196 = vector.load %arg7[%c0_110, %c0_111, %c0_112] : memref<1x1x64xf32, #tpu.memory_space<vmem>>, vector<1x1x64xf32>
    %197 = vector.shape_cast %196 : vector<1x1x64xf32> to vector<1x64xf32>
    %198 = vector.shape_cast %195 : vector<1x64xf32> to vector<1x1x64xf32>
    tpu.vector_store %arg7[%c0_110, %c0_111, %c0_112], %198 {strides = array<i32>} : memref<1x1x64xf32, #tpu.memory_space<vmem>>, vector<1x1x64xf32>,
    return
  }
  func.func @transform_0(%arg0: i32) -> (i32, i32) {
    %c0_i32 = arith.constant 0 : i32
    %c0_i32_0 = arith.constant 0 : i32
    return %arg0, %c0_i32 : i32, i32
  }
  func.func @transform_1(%arg0: i32) -> (i32, i32) {
    %c0_i32 = arith.constant 0 : i32
    %c0_i32_0 = arith.constant 0 : i32
    %c0_i32_1 = arith.constant 0 : i32
    return %c0_i32, %c0_i32_0 : i32, i32
  }
  func.func @transform_2(%arg0: i32) -> (i32, i32) {
    %c0_i32 = arith.constant 0 : i32
    %c0_i32_0 = arith.constant 0 : i32
    %c0_i32_1 = arith.constant 0 : i32
    return %c0_i32, %c0_i32_0 : i32, i32
  }
  func.func @transform_3(%arg0: i32) -> (i32, i32) {
    %c0_i32 = arith.constant 0 : i32
    %c0_i32_0 = arith.constant 0 : i32
    %c0_i32_1 = arith.constant 0 : i32
    return %c0_i32, %c0_i32_0 : i32, i32
  }
  func.func @transform_4(%arg0: i32) -> (i32, i32) {
    %c0_i32 = arith.constant 0 : i32
    %c0_i32_0 = arith.constant 0 : i32
    %c0_i32_1 = arith.constant 0 : i32
    return %c0_i32, %c0_i32_0 : i32, i32
  }
  func.func @transform_5(%arg0: i32) -> i32 {
    %c0_i32 = arith.constant 0 : i32
    %c0_i32_0 = arith.constant 0 : i32
    return %c0_i32 : i32
  }
  func.func @transform_6(%arg0: i32) -> (i32, i32, i32) {
    %c0_i32 = arith.constant 0 : i32
    %c0_i32_0 = arith.constant 0 : i32
    %c0_i32_1 = arith.constant 0 : i32
    return %arg0, %c0_i32, %c0_i32_0 : i32, i32, i32
  }
}

</mosaic_0001>

<bundles_post_ra>
// kernel: lstm_net_pallas.1
= control target key start
LH: loop header
LB: loop body
LE: loop exit
PB: predicated region body
PF: predicated region fallthrough
CT: control target
= control target key end

     0   :  { %v1710_v0 = vmov 0.0   ;;  %vm1711_vm0 = vmmov 0   ;;  %vm47_vm1 = vcmask 130048   ;;  %s1712_s20 = smov 32   ;;  %s1713_s21 = smov 96   ;;  %v185_v39 = vlaneseq  ;;  %s2301_s2 = inlined_call_operand.vmem [shape: f32[128,128], index: 2, kind: input, shape index: {}]   ;;  %s2302_s1 = inlined_call_operand.vmem [shape: f32[16,128], index: 1, kind: input, shape index: {}]   ;;  %s2303_s0 = inlined_call_operand.vmem [shape: f32[64,16], index: 0, kind: input, shape index: {}]   ;;  %s2304_s3 = inlined_call_operand.vmem [shape: f32[1,128], index: 3, kind: input, shape index: {}]   ;;  %s2305_s4 = inlined_call_operand.vmem [shape: f32[1,128], index: 4, kind: input, shape index: {}]   ;;  %s2306_s5 = inlined_call_operand.<no memory space> [shape: f32[1], index: 5, kind: input, shape index: {}]   ;;  %s2307_s6 = inlined_call_operand.vmem [shape: f32[1,1,64], index: 6, kind: output, shape index: {}]  }
   0x1   :  { %1338 = vmatprep.subr.mxu1 %v1710_v0  ;;  %v1754_v1 = vld [vmem:[%s2301_s2 + $0x78] sm:$0xff]  ;;  %v1759_v2 = vld [vmem:[%s2301_s2 + $0x70] sm:$0xff]  ;;  %1370 = vmatprep.mubr.msk.f32.mxu1 %vm1711_vm0, %v1710_v0  ;;  %v1768_v3 = vld [vmem:[%s2301_s2 + $0x68] sm:$0xff]  ;;  %s1714_s26 = smov 64   ;;  %vm1143_vm3 = vcmask 516096  }
   0x2   :  { %1339 = vmatpush3.msra.mxu1 %v1754_v1  ;;  %v39_v4 = vld [vmem:[%s2302_s1 + $0x8] sm:$0xff]  ;;  %v1778_v5 = vld [vmem:[%s2301_s2 + $0x60] sm:$0xff]  ;;  %v1791_v8 = vld [vmem:[%s2301_s2 + $0x58] sm:$0xff]  ;;  %v1984_v41 = vand.u32 127, %v185_v39 }
   0x3   :  { %1340 = vmatprep.subr.mxu1 %v1710_v0  ;;  %1322 = vmatprep.subr.mxu0 %v39_v4  ;;  %v38_v6 = vld [vmem:[%s2302_s1] sm:$0xff]  ;;  %v31_v9 = vld [vmem:[%s2303_s0 + $0x8] sm:$0xff]  ;;  %v1801_v10 = vld [vmem:[%s2301_s2 + $0x50] sm:$0xff] }
   0x4   :  { %1341 = vmatpush3.msra.mxu1 %v1759_v2  ;;  %1323 = vmatpush3.msra.mxu0 %v39_v4  ;;  %v30_v7 = vld [vmem:[%s2303_s0] sm:$0xff]  ;;  %v1810_v11 = vld [vmem:[%s2301_s2 + $0x48] sm:$0xff]  ;;  %v1828_v13 = vld [vmem:[%s2301_s2 + $0x38] sm:$0xff]  ;;  %vm187_vm2 = vcmp.lt.s32.totalorder %v1984_v41, 32 }
   0x5   :  { %1342 = vmatprep.subr.mxu1 %v1710_v0  ;;  %1324 = vmatprep.subr.mxu0 %v38_v6  ;;  %v1819_v12 = vld [vmem:[%s2301_s2 + $0x40] sm:$0xff]  ;;  %v1837_v14 = vld [vmem:[%s2301_s2 + $0x30] sm:$0xff]  ;;  %v1846_v15 = vld [vmem:[%s2301_s2 + $0x28] sm:$0xff] }
   0x6   :  { %1343 = vmatpush3.msra.mxu1 %v1768_v3  ;;  %1325 = vmatpush3.msra.mxu0 %v38_v6  ;;  %v1855_v16 = vld [vmem:[%s2301_s2 + $0x20] sm:$0xff]  ;;  %v1864_v17 = vld [vmem:[%s2301_s2 + $0x18] sm:$0xff]  ;;  %v1873_v18 = vld [vmem:[%s2301_s2 + $0x10] sm:$0xff] }
   0x7   :  { %1344 = vmatprep.subr.mxu1 %v1710_v0  ;;  %1326 = vmatprep.mubr.msk.f32.mxu0 %vm47_vm1, %v30_v7  ;;  %v1882_v19 = vld [vmem:[%s2301_s2 + $0x8] sm:$0xff]  ;;  %v1891_v20 = vld [vmem:[%s2301_s2] sm:$0xff]  ;;  %v32_v31 = vld [vmem:[%s2303_s0 + $0x10] sm:$0xff] }
   0x8   :  { %1345 = vmatpush3.msra.mxu1 %v1778_v5  ;;  %1327 = vmatmul.mubr.msk.f32.vlgmr.msra.gmra.mxu0 %vm47_vm1, %v31_v9  ;;  %v1952_v22 = vld [vmem:[%s2304_s3] ss:$0 sm:$0xff]  ;;  %v33_v32 = vld [vmem:[%s2303_s0 + $0x18] sm:$0xff]  ;;  %v35_v35 = vld [vmem:[%s2303_s0 + $0x28] sm:$0xff] }
   0x9   :  { %1346 = vmatprep.subr.mxu1 %v1710_v0  ;;  %1373 = vmatprep.subr.mxu0 %v1710_v0  ;;  %v34_v33 = vld [vmem:[%s2303_s0 + $0x20] sm:$0xff]  ;;  %v36_v36 = vld [vmem:[%s2303_s0 + $0x30] sm:$0xff]  ;;  %v37_v38 = vld [vmem:[%s2303_s0 + $0x38] sm:$0xff] }
   0xa   :  { %1347 = vmatpush3.msra.mxu1 %v1791_v8  ;;  %1374 = vmatpush3.msra.mxu0 %v1754_v1  ;;  %v1056_v41 = vld [vmem:[%s2305_s4] sm:$0x1] }
   0xb   :  { %1348 = vmatprep.subr.mxu1 %v1710_v0  ;;  %1375 = vmatprep.subr.mxu0 %v1710_v0 }
   0xc   :  { %1349 = vmatpush3.msra.mxu1 %v1801_v10  ;;  %1376 = vmatpush3.msra.mxu0 %v1759_v2 }
   0xd   :  { %1350 = vmatprep.subr.mxu1 %v1710_v0  ;;  %1377 = vmatprep.subr.mxu0 %v1710_v0 }
   0xe   :  { %1351 = vmatpush3.msra.mxu1 %v1810_v11  ;;  %1378 = vmatpush3.msra.mxu0 %v1768_v3 }
   0xf   :  { %1352 = vmatprep.subr.mxu1 %v1710_v0  ;;  %1379 = vmatprep.subr.mxu0 %v1710_v0 }
  0x10   :  { %1353 = vmatpush3.msra.mxu1 %v1819_v12  ;;  %1380 = vmatpush3.msra.mxu0 %v1778_v5 }
  0x11   :  { %1354 = vmatprep.subr.mxu1 %v1710_v0  ;;  %1381 = vmatprep.subr.mxu0 %v1710_v0 }
  0x12   :  { %1355 = vmatpush3.msra.mxu1 %v1828_v13  ;;  %1382 = vmatpush3.msra.mxu0 %v1791_v8 }
  0x13   :  { %1356 = vmatprep.subr.mxu1 %v1710_v0  ;;  %1383 = vmatprep.subr.mxu0 %v1710_v0 }
  0x14   :  { %1357 = vmatpush3.msra.mxu1 %v1837_v14  ;;  %1384 = vmatpush3.msra.mxu0 %v1801_v10 }
  0x15   :  { %1358 = vmatprep.subr.mxu1 %v1710_v0  ;;  %1385 = vmatprep.subr.mxu0 %v1710_v0 }
  0x16   :  { %1359 = vmatpush3.msra.mxu1 %v1846_v15  ;;  %1386 = vmatpush3.msra.mxu0 %v1810_v11 }
  0x17   :  { %1360 = vmatprep.subr.mxu1 %v1710_v0  ;;  %1387 = vmatprep.subr.mxu0 %v1710_v0 }
  0x18   :  { %1361 = vmatpush3.msra.mxu1 %v1855_v16  ;;  %1388 = vmatpush3.msra.mxu0 %v1819_v12 }
  0x19   :  { %1362 = vmatprep.subr.mxu1 %v1710_v0  ;;  %1389 = vmatprep.subr.mxu0 %v1710_v0 }
  0x1a   :  { %1363 = vmatpush3.msra.mxu1 %v1864_v17  ;;  %1390 = vmatpush3.msra.mxu0 %v1828_v13 }
  0x1b   :  { %1364 = vmatprep.subr.mxu1 %v1710_v0  ;;  %1391 = vmatprep.subr.mxu0 %v1710_v0 }
  0x1c   :  { %1365 = vmatpush3.msra.mxu1 %v1873_v18  ;;  %1392 = vmatpush3.msra.mxu0 %v1837_v14 }
  0x1d   :  { %1366 = vmatprep.subr.mxu1 %v1710_v0  ;;  %1393 = vmatprep.subr.mxu0 %v1710_v0 }
  0x1e   :  { %1367 = vmatpush3.msra.mxu1 %v1882_v19  ;;  %1394 = vmatpush3.msra.mxu0 %v1846_v15 }
  0x1f   :  { %1368 = vmatprep.subr.mxu1 %v1710_v0  ;;  %1395 = vmatprep.subr.mxu0 %v1710_v0 }
  0x20   :  { %1369 = vmatpush3.msra.mxu1 %v1891_v20  ;;  %1396 = vmatpush3.msra.mxu0 %v1855_v16 }
  0x21   :  { %1371 = vmatmul.mubr.f32.vlgmr.msra.gmra.mxu1 %v1710_v0  ;;  %1408 = vmatprep.subr.mxu1 %v1710_v0 }
  0x22   :  { %1397 = vmatprep.subr.mxu0 %v1710_v0  ;;  %1409 = vmatpush3.msra.mxu1 %v1754_v1 }
  0x23   :  { %1398 = vmatpush3.msra.mxu0 %v1864_v17  ;;  %1410 = vmatprep.subr.mxu1 %v1710_v0 }
  0x24   :  { %1399 = vmatprep.subr.mxu0 %v1710_v0  ;;  %1411 = vmatpush3.msra.mxu1 %v1759_v2 }
  0x25   :  { %1400 = vmatpush3.msra.mxu0 %v1873_v18  ;;  %1412 = vmatprep.subr.mxu1 %v1710_v0 }
  0x26   :  { %1401 = vmatprep.subr.mxu0 %v1710_v0  ;;  %1413 = vmatpush3.msra.mxu1 %v1768_v3 }
  0x27   :  { %1402 = vmatpush3.msra.mxu0 %v1882_v19  ;;  %1414 = vmatprep.subr.mxu1 %v1710_v0 }
  0x28   :  { %1403 = vmatprep.subr.mxu0 %v1710_v0  ;;  %1415 = vmatpush3.msra.mxu1 %v1778_v5 }
  0x29   :  { %1404 = vmatpush3.msra.mxu0 %v1891_v20  ;;  %1416 = vmatprep.subr.mxu1 %v1710_v0 }
  0x2a   :  { %1417 = vmatpush3.msra.mxu1 %v1791_v8  ;;  %1440 = vmatprep.mubr.msk.f32.mxu1 %vm1711_vm0, %v1710_v0 }
  0x2b   :  { %1418 = vmatprep.subr.mxu1 %v1710_v0  ;;  %1443 = vmatprep.subr.mxu0 %v1710_v0 }
  0x2c   :  { %1419 = vmatpush3.msra.mxu1 %v1801_v10  ;;  %1329 = vmatprep.mubr.msk.f32.mxu0 %vm47_vm1, %v32_v31 }
  0x2d   :  { %1420 = vmatprep.subr.mxu1 %v1710_v0  ;;  %1330 = vmatmul.mubr.msk.f32.gmra.mxu0 %vm47_vm1, %v33_v32 }
  0x2e   :  { %1421 = vmatpush3.msra.mxu1 %v1810_v11  ;;  %1332 = vmatprep.mubr.msk.f32.mxu0 %vm47_vm1, %v34_v33 }
  0x2f   :  { %1422 = vmatprep.subr.mxu1 %v1710_v0 }
  0x30   :  { %1423 = vmatpush3.msra.mxu1 %v1819_v12 }
  0x31   :  { %1424 = vmatprep.subr.mxu1 %v1710_v0  ;;  %1333 = vmatmul.mubr.msk.f32.gmra.mxu0 %vm47_vm1, %v35_v35 }
  0x32   :  { %1425 = vmatpush3.msra.mxu1 %v1828_v13  ;;  %1335 = vmatprep.mubr.msk.f32.mxu0 %vm47_vm1, %v36_v36 }
  0x33   :  { %1426 = vmatprep.subr.mxu1 %v1710_v0 }
  0x34   :  { %1427 = vmatpush3.msra.mxu1 %v1837_v14 }
  0x35   :  { %1428 = vmatprep.subr.mxu1 %v1710_v0  ;;  %1336 = vmatmul.mubr.msk.f32.gmra.mxu0 %vm47_vm1, %v37_v38 }
  0x36   :  { %1429 = vmatpush3.msra.mxu1 %v1846_v15  ;;  %1405 = vmatprep.mubr.msk.f32.mxu0 %vm1711_vm0, %v1710_v0 }
  0x37   :  { %1430 = vmatprep.subr.mxu1 %v1710_v0 }
  0x38   :  { %1431 = vmatpush3.msra.mxu1 %v1855_v16 }
  0x39   :  { %1432 = vmatprep.subr.mxu1 %v1710_v0 }
  0x3a   :  { %1433 = vmatpush3.msra.mxu1 %v1864_v17 }
  0x3b   :  { %1434 = vmatprep.subr.mxu1 %v1710_v0 }
  0x3c   :  { %1435 = vmatpush3.msra.mxu1 %v1873_v18 }
  0x3d   :  { %1436 = vmatprep.subr.mxu1 %v1710_v0 }
  0x3e   :  { %1437 = vmatpush3.msra.mxu1 %v1882_v19 }
  0x3f   :  { %1438 = vmatprep.subr.mxu1 %v1710_v0 }
  0x40   :  { %1439 = vmatpush3.msra.mxu1 %v1891_v20 }
  0x41   :  { %1478 = vmatprep.subr.mxu1 %v1710_v0 }
  0xc8   :  { %v1947_v21 = vpop.f32.mrf.mxu0 }
  0xc9   :  { %v144_v56 = vadd.f32 %v1947_v21, %v1952_v22 }
  0xca   :  { %v138_v23 = vpop.f32.mrf.mxu0 }
  0xcb   :  { %v139_v24 = vadd.f32 %v1952_v22, %v138_v23 }
  0xe1   :  { %v273_v25 = vpop.f32.mrf.mxu1 }
  0xe2   :  { %v277_v26 = vadd.f32 %v273_v25, %v139_v24 }
  0xe3   :  { %v1372_v27 = vpop.f32.mrf.mxu1 }
  0xe4   :  { %v1158_v28 = vmul.f32 -1.442695, %v277_v26 }
  0xe6   :  { %1642 = vpow2.f32 %v1158_v28 }
  0xed   :  { %v2029_v50 = vpop.f32.mrf.mxu0 }
  0xef   :  { %v2031_v51 = vpop.f32.mrf.mxu0 }
  0xf0   :  { %v149_v28 = vadd.f32 %v1952_v22, %v2031_v51 }
  0xf1   :  { %v2033_v52 = vpop.f32.mrf.mxu0 }
  0xf3   :  { %v1643_v29 = vpop.eup %1642  ;;  %v2035_v53 = vpop.f32.mrf.mxu0 }
  0xf4   :  { %v281_v30 = vadd.f32 1.0, %v1643_v29 }
  0xf5   :  { %v2037_v54 = vpop.f32.mrf.mxu0 }
  0xf6   :  { %1644 = vrcp.f32 %v281_v30 }
  0xf7   :  { %1646 = vtanh.f32 %v277_v26  ;;  %v2039_v55 = vpop.f32.mrf.mxu0 }
 0x103   :  { %v1645_v34 = vpop.eup %1644 }
 0x104   :  { %289 = vrot.lane.b32.xlu1 %v1645_v34, %s1712_s20  ;;  %285 = vrot.lane.b32.xlu0 %v1645_v34, %s1713_s21  ;;  %v1647_v37 = vpop.eup %1646 }
 0x108   :  { %287 = vrot.lane.b32.xlu0 %v1647_v37, %s1714_s26 }
 0x176   :  { %v286_v40 = vpop.permute.xlu0 %285  ;;  %v290_v48 = vpop.permute.xlu1 %289 }
 0x177   :  { %v291_v43 = vmul.f32 0.0, %v286_v40 }
 0x17a   :  { %v288_v42 = vpop.permute.xlu0 %287 }
 0x17b   :  { %v292_v44 = vmul.f32 %v1645_v34, %v288_v42 }
 0x17d   :  { %v293_v45 = vadd.f32 %v292_v44, %v291_v43 }
 0x17f   :  { %v1989_v46 = vsel %vm187_vm2, %v293_v45, 0.0 }
 0x180   :  { %1648 = vtanh.f32 %v1989_v46 }
 0x18d   :  { %v1649_v47 = vpop.eup %1648 }
 0x18e   :  { %v1992_v49 = vmul.f32 %v1649_v47, %v290_v48  ;;  %v154_v47 = vadd.f32 %v2029_v50, %v1952_v22 }
 0x190   :  { %1406 = vmatmul.mubr.f32.vlgmr.msra.gmra.mxu0 %v1992_v49 }
 0x191   :  { %1444 = vmatpush3.msra.mxu0 %v1754_v1  ;;  %1475 = vmatprep.mubr.msk.f32.mxu0 %vm1711_vm0, %v1710_v0 }
 0x192   :  { %1445 = vmatprep.subr.mxu0 %v1710_v0 }
 0x193   :  { %1446 = vmatpush3.msra.mxu0 %v1759_v2 }
 0x194   :  { %1447 = vmatprep.subr.mxu0 %v1710_v0 }
 0x195   :  { %1448 = vmatpush3.msra.mxu0 %v1768_v3 }
 0x196   :  { %1449 = vmatprep.subr.mxu0 %v1710_v0 }
 0x197   :  { %1450 = vmatpush3.msra.mxu0 %v1778_v5 }
 0x198   :  { %1451 = vmatprep.subr.mxu0 %v1710_v0 }
 0x199   :  { %1452 = vmatpush3.msra.mxu0 %v1791_v8 }
 0x19a   :  { %1453 = vmatprep.subr.mxu0 %v1710_v0 }
 0x19b   :  { %1454 = vmatpush3.msra.mxu0 %v1801_v10 }
 0x19c   :  { %1455 = vmatprep.subr.mxu0 %v1710_v0 }
 0x19d   :  { %1456 = vmatpush3.msra.mxu0 %v1810_v11 }
 0x19e   :  { %1457 = vmatprep.subr.mxu0 %v1710_v0 }
 0x19f   :  { %1458 = vmatpush3.msra.mxu0 %v1819_v12 }
 0x1a0   :  { %1459 = vmatprep.subr.mxu0 %v1710_v0 }
 0x1a1   :  { %1460 = vmatpush3.msra.mxu0 %v1828_v13 }
 0x1a2   :  { %1461 = vmatprep.subr.mxu0 %v1710_v0 }
 0x1a3   :  { %1462 = vmatpush3.msra.mxu0 %v1837_v14 }
 0x1a4   :  { %1463 = vmatprep.subr.mxu0 %v1710_v0 }
 0x1a5   :  { %1464 = vmatpush3.msra.mxu0 %v1846_v15 }
 0x1a6   :  { %1465 = vmatprep.subr.mxu0 %v1710_v0 }
 0x1a7   :  { %1466 = vmatpush3.msra.mxu0 %v1855_v16 }
 0x1a8   :  { %1467 = vmatprep.subr.mxu0 %v1710_v0 }
 0x1a9   :  { %1468 = vmatpush3.msra.mxu0 %v1864_v17 }
 0x1aa   :  { %1469 = vmatprep.subr.mxu0 %v1710_v0 }
 0x1ab   :  { %1470 = vmatpush3.msra.mxu0 %v1873_v18 }
 0x1ac   :  { %1471 = vmatprep.subr.mxu0 %v1710_v0 }
 0x1ad   :  { %1472 = vmatpush3.msra.mxu0 %v1882_v19 }
 0x1ae   :  { %1473 = vmatprep.subr.mxu0 %v1710_v0 }
 0x1af   :  { %1474 = vmatpush3.msra.mxu0 %v1891_v20 }
 0x1b0   :  { %1513 = vmatprep.subr.mxu0 %v1710_v0 }
 0x250   :  { %v381_v57 = vpop.f32.mrf.mxu0 }
 0x251   :  { %v385_v58 = vadd.f32 %v381_v57, %v144_v56 }
 0x252   :  { %v1407_v59 = vpop.f32.mrf.mxu0 }
 0x253   :  { %v1159_v60 = vmul.f32 -1.442695, %v385_v58  ;;  %1650 = vtanh.f32 %v385_v58 }
 0x255   :  { %1652 = vpow2.f32 %v1159_v60 }
 0x260   :  { %v1651_v61 = vpop.eup %1650 }
 0x261   :  { %395 = vrot.lane.b32.xlu0 %v1651_v61, %s1714_s26 }
 0x262   :  { %v1653_v62 = vpop.eup %1652 }
 0x263   :  { %v389_v63 = vadd.f32 1.0, %v1653_v62 }
 0x265   :  { %1654 = vrcp.f32 %v389_v63 }
 0x272   :  { %v1655_v4 = vpop.eup %1654 }
 0x273   :  { %393 = vrot.lane.b32.xlu1 %v1655_v4, %s1713_s21 }
 0x277   :  { %397 = vrot.lane.b32.xlu1 %v1655_v4, %s1712_s20 }
 0x2d3   :  { %v396_v6 = vpop.permute.xlu0 %395 }
 0x2d4   :  { %v400_v9 = vmul.f32 %v1655_v4, %v396_v6 }
 0x2e5   :  { %v394_v7 = vpop.permute.xlu1 %393 }
 0x2e6   :  { %v399_v21 = vmul.f32 %v394_v7, %v1989_v46 }
 0x2e8   :  { %v401_v23 = vadd.f32 %v400_v9, %v399_v21 }
 0x2e9   :  { %v398_v26 = vpop.permute.xlu1 %397 }
 0x2ea   :  { %v402_v24 = vsel %vm187_vm2, %v401_v23, 0.0 }
 0x2eb   :  { %1656 = vtanh.f32 %v402_v24 }
 0x2f8   :  { %v1657_v25 = vpop.eup %1656 }
 0x2f9   :  { %v2049_v27 = vmul.f32 %v1657_v25, %v398_v26  ;;  %v164_v25 = vadd.f32 %v2033_v52, %v1952_v22 }
 0x2fb   :  { %1441 = vmatmul.mubr.f32.vlgmr.msra.gmra.mxu1 %v2049_v27 }
 0x2fc   :  { %1479 = vmatpush3.msra.mxu1 %v1754_v1  ;;  %1510 = vmatprep.mubr.msk.f32.mxu1 %vm1711_vm0, %v1710_v0 }
 0x2fd   :  { %1480 = vmatprep.subr.mxu1 %v1710_v0 }
 0x2fe   :  { %1481 = vmatpush3.msra.mxu1 %v1759_v2 }
 0x2ff   :  { %1482 = vmatprep.subr.mxu1 %v1710_v0 }
 0x300   :  { %1483 = vmatpush3.msra.mxu1 %v1768_v3 }
 0x301   :  { %1484 = vmatprep.subr.mxu1 %v1710_v0 }
 0x302   :  { %1485 = vmatpush3.msra.mxu1 %v1778_v5 }
 0x303   :  { %1486 = vmatprep.subr.mxu1 %v1710_v0 }
 0x304   :  { %1487 = vmatpush3.msra.mxu1 %v1791_v8 }
 0x305   :  { %1488 = vmatprep.subr.mxu1 %v1710_v0 }
 0x306   :  { %1489 = vmatpush3.msra.mxu1 %v1801_v10 }
 0x307   :  { %1490 = vmatprep.subr.mxu1 %v1710_v0 }
 0x308   :  { %1491 = vmatpush3.msra.mxu1 %v1810_v11 }
 0x309   :  { %1492 = vmatprep.subr.mxu1 %v1710_v0 }
 0x30a   :  { %1493 = vmatpush3.msra.mxu1 %v1819_v12 }
 0x30b   :  { %1494 = vmatprep.subr.mxu1 %v1710_v0 }
 0x30c   :  { %1495 = vmatpush3.msra.mxu1 %v1828_v13 }
 0x30d   :  { %1496 = vmatprep.subr.mxu1 %v1710_v0 }
 0x30e   :  { %1497 = vmatpush3.msra.mxu1 %v1837_v14 }
 0x30f   :  { %1498 = vmatprep.subr.mxu1 %v1710_v0 }
 0x310   :  { %1499 = vmatpush3.msra.mxu1 %v1846_v15 }
 0x311   :  { %1500 = vmatprep.subr.mxu1 %v1710_v0 }
 0x312   :  { %1501 = vmatpush3.msra.mxu1 %v1855_v16 }
 0x313   :  { %1502 = vmatprep.subr.mxu1 %v1710_v0 }
 0x314   :  { %1503 = vmatpush3.msra.mxu1 %v1864_v17 }
 0x315   :  { %1504 = vmatprep.subr.mxu1 %v1710_v0 }
 0x316   :  { %1505 = vmatpush3.msra.mxu1 %v1873_v18 }
 0x317   :  { %1506 = vmatprep.subr.mxu1 %v1710_v0 }
 0x318   :  { %1507 = vmatpush3.msra.mxu1 %v1882_v19 }
 0x319   :  { %1508 = vmatprep.subr.mxu1 %v1710_v0 }
 0x31a   :  { %1509 = vmatpush3.msra.mxu1 %v1891_v20 }
 0x31b   :  { %1548 = vmatprep.subr.mxu1 %v1710_v0 }
 0x3bb   :  { %v489_v29 = vpop.f32.mrf.mxu1 }
 0x3bc   :  { %v493_v30 = vadd.f32 %v489_v29, %v149_v28 }
 0x3bd   :  { %v1442_v31 = vpop.f32.mrf.mxu1 }
 0x3be   :  { %v1160_v32 = vmul.f32 -1.442695, %v493_v30  ;;  %1658 = vtanh.f32 %v493_v30 }
 0x3c0   :  { %1660 = vpow2.f32 %v1160_v32 }
 0x3cb   :  { %v1659_v33 = vpop.eup %1658 }
 0x3cc   :  { %503 = vrot.lane.b32.xlu1 %v1659_v33, %s1714_s26 }
 0x3cd   :  { %v1661_v34 = vpop.eup %1660 }
 0x3ce   :  { %v497_v35 = vadd.f32 1.0, %v1661_v34 }
 0x3d0   :  { %1662 = vrcp.f32 %v497_v35 }
 0x3dd   :  { %v1663_v36 = vpop.eup %1662 }
 0x3de   :  { %501 = vrot.lane.b32.xlu0 %v1663_v36, %s1713_s21 }
 0x3e2   :  { %505 = vrot.lane.b32.xlu0 %v1663_v36, %s1712_s20 }
 0x43e   :  { %v504_v37 = vpop.permute.xlu1 %503 }
 0x43f   :  { %v508_v39 = vmul.f32 %v1663_v36, %v504_v37 }
 0x450   :  { %v502_v38 = vpop.permute.xlu0 %501 }
 0x451   :  { %v507_v40 = vmul.f32 %v502_v38, %v402_v24 }
 0x453   :  { %v509_v42 = vadd.f32 %v508_v39, %v507_v40 }
 0x454   :  { %v506_v45 = vpop.permute.xlu0 %505 }
 0x455   :  { %v510_v43 = vsel %vm187_vm2, %v509_v42, 0.0 }
 0x456   :  { %1664 = vtanh.f32 %v510_v43 }
 0x463   :  { %v1665_v44 = vpop.eup %1664 }
 0x464   :  { %v2093_v46 = vmul.f32 %v1665_v44, %v506_v45  ;;  %v169_v44 = vadd.f32 %v1952_v22, %v2039_v55  ;;  %v960_v55 = vld [vmem:[%s2301_s2 + $0x68] sm:$0xff] }
 0x466   :  { %1476 = vmatmul.mubr.f32.vlgmr.msra.gmra.mxu0 %v2093_v46 }
 0x467   :  { %1514 = vmatpush3.msra.mxu0 %v1754_v1  ;;  %1545 = vmatprep.mubr.msk.f32.mxu0 %vm1711_vm0, %v1710_v0 }
 0x468   :  { %1515 = vmatprep.subr.mxu0 %v1710_v0 }
 0x469   :  { %1516 = vmatpush3.msra.mxu0 %v1759_v2 }
 0x46a   :  { %1517 = vmatprep.subr.mxu0 %v1710_v0 }
 0x46b   :  { %1518 = vmatpush3.msra.mxu0 %v1768_v3 }
 0x46c   :  { %1519 = vmatprep.subr.mxu0 %v1710_v0 }
 0x46d   :  { %1520 = vmatpush3.msra.mxu0 %v1778_v5 }
 0x46e   :  { %1521 = vmatprep.subr.mxu0 %v1710_v0 }
 0x46f   :  { %1522 = vmatpush3.msra.mxu0 %v1791_v8 }
 0x470   :  { %1523 = vmatprep.subr.mxu0 %v1710_v0 }
 0x471   :  { %1524 = vmatpush3.msra.mxu0 %v1801_v10 }
 0x472   :  { %1525 = vmatprep.subr.mxu0 %v1710_v0 }
 0x473   :  { %1526 = vmatpush3.msra.mxu0 %v1810_v11 }
 0x474   :  { %1527 = vmatprep.subr.mxu0 %v1710_v0 }
 0x475   :  { %1528 = vmatpush3.msra.mxu0 %v1819_v12 }
 0x476   :  { %1529 = vmatprep.subr.mxu0 %v1710_v0 }
 0x477   :  { %1530 = vmatpush3.msra.mxu0 %v1828_v13 }
 0x478   :  { %1531 = vmatprep.subr.mxu0 %v1710_v0 }
 0x479   :  { %1532 = vmatpush3.msra.mxu0 %v1837_v14 }
 0x47a   :  { %1533 = vmatprep.subr.mxu0 %v1710_v0 }
 0x47b   :  { %1534 = vmatpush3.msra.mxu0 %v1846_v15 }
 0x47c   :  { %1535 = vmatprep.subr.mxu0 %v1710_v0 }
 0x47d   :  { %1536 = vmatpush3.msra.mxu0 %v1855_v16 }
 0x47e   :  { %1537 = vmatprep.subr.mxu0 %v1710_v0 }
 0x47f   :  { %1538 = vmatpush3.msra.mxu0 %v1864_v17 }
 0x480   :  { %1539 = vmatprep.subr.mxu0 %v1710_v0 }
 0x481   :  { %1540 = vmatpush3.msra.mxu0 %v1873_v18 }
 0x482   :  { %1541 = vmatprep.subr.mxu0 %v1710_v0 }
 0x483   :  { %1542 = vmatpush3.msra.mxu0 %v1882_v19 }
 0x484   :  { %1543 = vmatprep.subr.mxu0 %v1710_v0 }
 0x485   :  { %1544 = vmatpush3.msra.mxu0 %v1891_v20 }
 0x486   :  { %1583 = vmatprep.subr.mxu0 %v1710_v0 }
 0x526   :  { %v597_v48 = vpop.f32.mrf.mxu0 }
 0x527   :  { %v601_v51 = vadd.f32 %v597_v48, %v154_v47 }
 0x528   :  { %v1477_v56 = vpop.f32.mrf.mxu0 }
 0x529   :  { %v1161_v57 = vmul.f32 -1.442695, %v601_v51  ;;  %1666 = vtanh.f32 %v601_v51  ;;  %v962_v56 = vld [vmem:[%s2301_s2 + $0x78] sm:$0xff] }
 0x52b   :  { %1668 = vpow2.f32 %v1161_v57  ;;  %v961_v57 = vld [vmem:[%s2301_s2 + $0x70] sm:$0xff] }
 0x536   :  { %v1667_v58 = vpop.eup %1666 }
 0x537   :  { %611 = vrot.lane.b32.xlu0 %v1667_v58, %s1714_s26  ;;  %v959_v58 = vld [vmem:[%s2301_s2 + $0x60] sm:$0xff] }
 0x538   :  { %v1669_v59 = vpop.eup %1668 }
 0x539   :  { %v605_v60 = vadd.f32 1.0, %v1669_v59  ;;  %v958_v59 = vld [vmem:[%s2301_s2 + $0x58] sm:$0xff] }
 0x53b   :  { %1670 = vrcp.f32 %v605_v60 }
 0x548   :  { %v1671_v61 = vpop.eup %1670 }
 0x549   :  { %609 = vrot.lane.b32.xlu1 %v1671_v61, %s1713_s21 }
 0x54d   :  { %613 = vrot.lane.b32.xlu1 %v1671_v61, %s1712_s20 }
 0x5a9   :  { %v612_v62 = vpop.permute.xlu0 %611 }
 0x5aa   :  { %v616_v50 = vmul.f32 %v1671_v61, %v612_v62 }
 0x5bb   :  { %v610_v63 = vpop.permute.xlu1 %609 }
 0x5bc   :  { %v615_v4 = vmul.f32 %v610_v63, %v510_v43  ;;  %v957_v63 = vld [vmem:[%s2301_s2 + $0x50] sm:$0xff] }
 0x5be   :  { %v617_v6 = vadd.f32 %v616_v50, %v615_v4  ;;  %v956_v50 = vld [vmem:[%s2301_s2 + $0x48] sm:$0xff]  ;;  %v955_v4 = vld [vmem:[%s2301_s2 + $0x40] sm:$0xff] }
 0x5bf   :  { %v614_v21 = vpop.permute.xlu1 %613 }
 0x5c0   :  { %v618_v7 = vsel %vm187_vm2, %v617_v6, 0.0  ;;  %v954_v6 = vld [vmem:[%s2301_s2 + $0x38] sm:$0xff] }
 0x5c1   :  { %1672 = vtanh.f32 %v618_v7 }
 0x5ce   :  { %v1673_v9 = vpop.eup %1672 }
 0x5cf   :  { %v2137_v23 = vmul.f32 %v1673_v9, %v614_v21  ;;  %v952_v9 = vld [vmem:[%s2301_s2 + $0x28] sm:$0xff]  ;;  %v951_v21 = vld [vmem:[%s2301_s2 + $0x20] sm:$0xff] }
 0x5d1   :  { %1511 = vmatmul.mubr.f32.vlgmr.msra.gmra.mxu1 %v2137_v23 }
 0x5d2   :  { %1549 = vmatpush3.msra.mxu1 %v1754_v1  ;;  %1580 = vmatprep.mubr.msk.f32.mxu1 %vm1711_vm0, %v1710_v0  ;;  %v159_v1 = vadd.f32 %v1952_v22, %v2035_v53 }
 0x5d3   :  { %1550 = vmatprep.subr.mxu1 %v1710_v0 }
 0x5d4   :  { %1551 = vmatpush3.msra.mxu1 %v1759_v2 }
 0x5d5   :  { %1552 = vmatprep.subr.mxu1 %v1710_v0 }
 0x5d6   :  { %1553 = vmatpush3.msra.mxu1 %v1768_v3 }
 0x5d7   :  { %1554 = vmatprep.subr.mxu1 %v1710_v0 }
 0x5d8   :  { %1555 = vmatpush3.msra.mxu1 %v1778_v5 }
 0x5d9   :  { %1556 = vmatprep.subr.mxu1 %v1710_v0 }
 0x5da   :  { %1557 = vmatpush3.msra.mxu1 %v1791_v8 }
 0x5db   :  { %1558 = vmatprep.subr.mxu1 %v1710_v0 }
 0x5dc   :  { %1559 = vmatpush3.msra.mxu1 %v1801_v10 }
 0x5dd   :  { %1560 = vmatprep.subr.mxu1 %v1710_v0 }
 0x5de   :  { %1561 = vmatpush3.msra.mxu1 %v1810_v11 }
 0x5df   :  { %1562 = vmatprep.subr.mxu1 %v1710_v0 }
 0x5e0   :  { %1563 = vmatpush3.msra.mxu1 %v1819_v12 }
 0x5e1   :  { %1564 = vmatprep.subr.mxu1 %v1710_v0 }
 0x5e2   :  { %1565 = vmatpush3.msra.mxu1 %v1828_v13 }
 0x5e3   :  { %1566 = vmatprep.subr.mxu1 %v1710_v0 }
 0x5e4   :  { %1567 = vmatpush3.msra.mxu1 %v1837_v14 }
 0x5e5   :  { %1568 = vmatprep.subr.mxu1 %v1710_v0 }
 0x5e6   :  { %1569 = vmatpush3.msra.mxu1 %v1846_v15 }
 0x5e7   :  { %1570 = vmatprep.subr.mxu1 %v1710_v0 }
 0x5e8   :  { %1571 = vmatpush3.msra.mxu1 %v1855_v16 }
 0x5e9   :  { %1572 = vmatprep.subr.mxu1 %v1710_v0 }
 0x5ea   :  { %1573 = vmatpush3.msra.mxu1 %v1864_v17 }
 0x5eb   :  { %1574 = vmatprep.subr.mxu1 %v1710_v0 }
 0x5ec   :  { %1575 = vmatpush3.msra.mxu1 %v1873_v18 }
 0x5ed   :  { %1576 = vmatprep.subr.mxu1 %v1710_v0 }
 0x5ee   :  { %1577 = vmatpush3.msra.mxu1 %v1882_v19 }
 0x5ef   :  { %1578 = vmatprep.subr.mxu1 %v1710_v0 }
 0x5f0   :  { %1579 = vmatpush3.msra.mxu1 %v1891_v20 }
 0x5f1   :  { %1618 = vmatprep.subr.mxu1 %v1710_v0 }
 0x691   :  { %v705_v2 = vpop.f32.mrf.mxu1 }
 0x692   :  { %v709_v3 = vadd.f32 %v705_v2, %v159_v1  ;;  %v950_v2 = vld [vmem:[%s2301_s2 + $0x18] sm:$0xff] }
 0x693   :  { %v1512_v5 = vpop.f32.mrf.mxu1 }
 0x694   :  { %v1162_v8 = vmul.f32 -1.442695, %v709_v3  ;;  %1674 = vtanh.f32 %v709_v3  ;;  %v949_v3 = vld [vmem:[%s2301_s2 + $0x10] sm:$0xff]  ;;  %v948_v5 = vld [vmem:[%s2301_s2 + $0x8] sm:$0xff] }
 0x696   :  { %1676 = vpow2.f32 %v1162_v8  ;;  %v947_v8 = vld [vmem:[%s2301_s2] sm:$0xff] }
 0x6a1   :  { %v1675_v10 = vpop.eup %1674 }
 0x6a2   :  { %719 = vrot.lane.b32.xlu1 %v1675_v10, %s1714_s26 }
 0x6a3   :  { %v1677_v11 = vpop.eup %1676 }
 0x6a4   :  { %v713_v12 = vadd.f32 1.0, %v1677_v11 }
 0x6a6   :  { %1678 = vrcp.f32 %v713_v12 }
 0x6b3   :  { %v1679_v13 = vpop.eup %1678 }
 0x6b4   :  { %717 = vrot.lane.b32.xlu0 %v1679_v13, %s1713_s21 }
 0x6b8   :  { %721 = vrot.lane.b32.xlu0 %v1679_v13, %s1712_s20 }
 0x714   :  { %v720_v14 = vpop.permute.xlu1 %719 }
 0x715   :  { %v724_v16 = vmul.f32 %v1679_v13, %v720_v14 }
 0x726   :  { %v718_v15 = vpop.permute.xlu0 %717 }
 0x727   :  { %v723_v17 = vmul.f32 %v718_v15, %v618_v7  ;;  %v953_v7 = vld [vmem:[%s2301_s2 + $0x30] sm:$0xff] }
 0x729   :  { %v725_v18 = vadd.f32 %v724_v16, %v723_v17 }
 0x72a   :  { %v722_v53 = vpop.permute.xlu0 %721 }
 0x72b   :  { %v726_v19 = vsel %vm187_vm2, %v725_v18, 0.0 }
 0x72c   :  { %1680 = vtanh.f32 %v726_v19 }
 0x739   :  { %v1681_v20 = vpop.eup %1680 }
 0x73a   :  { %v2181_v24 = vmul.f32 %v1681_v20, %v722_v53 }
 0x73c   :  { %1546 = vmatmul.mubr.f32.vlgmr.msra.gmra.mxu0 %v2181_v24 }
 0x73d   :  { %1615 = vmatprep.mubr.msk.f32.mxu0 %vm1711_vm0, %v1710_v0  ;;  %1584 = vmatpush3.msra.mxu0 %v962_v56 }
 0x73e   :  { %1585 = vmatprep.subr.mxu0 %v1710_v0 }
 0x73f   :  { %1586 = vmatpush3.msra.mxu0 %v961_v57 }
 0x740   :  { %1587 = vmatprep.subr.mxu0 %v1710_v0 }
 0x741   :  { %1588 = vmatpush3.msra.mxu0 %v960_v55 }
 0x742   :  { %1589 = vmatprep.subr.mxu0 %v1710_v0 }
 0x743   :  { %1590 = vmatpush3.msra.mxu0 %v959_v58 }
 0x744   :  { %1591 = vmatprep.subr.mxu0 %v1710_v0 }
 0x745   :  { %1592 = vmatpush3.msra.mxu0 %v958_v59 }
 0x746   :  { %1593 = vmatprep.subr.mxu0 %v1710_v0 }
 0x747   :  { %1594 = vmatpush3.msra.mxu0 %v957_v63 }
 0x748   :  { %1595 = vmatprep.subr.mxu0 %v1710_v0 }
 0x749   :  { %1596 = vmatpush3.msra.mxu0 %v956_v50 }
 0x74a   :  { %1597 = vmatprep.subr.mxu0 %v1710_v0 }
 0x74b   :  { %1598 = vmatpush3.msra.mxu0 %v955_v4 }
 0x74c   :  { %1599 = vmatprep.subr.mxu0 %v1710_v0 }
 0x74d   :  { %1600 = vmatpush3.msra.mxu0 %v954_v6 }
 0x74e   :  { %1601 = vmatprep.subr.mxu0 %v1710_v0 }
 0x74f   :  { %1602 = vmatpush3.msra.mxu0 %v953_v7 }
 0x750   :  { %1603 = vmatprep.subr.mxu0 %v1710_v0 }
 0x751   :  { %1604 = vmatpush3.msra.mxu0 %v952_v9 }
 0x752   :  { %1605 = vmatprep.subr.mxu0 %v1710_v0 }
 0x753   :  { %1606 = vmatpush3.msra.mxu0 %v951_v21 }
 0x754   :  { %1607 = vmatprep.subr.mxu0 %v1710_v0 }
 0x755   :  { %1608 = vmatpush3.msra.mxu0 %v950_v2 }
 0x756   :  { %1609 = vmatprep.subr.mxu0 %v1710_v0 }
 0x757   :  { %1610 = vmatpush3.msra.mxu0 %v949_v3 }
 0x758   :  { %1611 = vmatprep.subr.mxu0 %v1710_v0 }
 0x759   :  { %1612 = vmatpush3.msra.mxu0 %v948_v5 }
 0x75a   :  { %1613 = vmatprep.subr.mxu0 %v1710_v0 }
 0x75b   :  { %1614 = vmatpush3.msra.mxu0 %v947_v8 }
 0x7fc   :  { %v813_v26 = vpop.f32.mrf.mxu0 }
 0x7fd   :  { %v817_v28 = vadd.f32 %v813_v26, %v164_v25 }
 0x7fe   :  { %v1547_v29 = vpop.f32.mrf.mxu0 }
 0x7ff   :  { %v1163_v30 = vmul.f32 -1.442695, %v817_v28  ;;  %1682 = vtanh.f32 %v817_v28 }
 0x801   :  { %1684 = vpow2.f32 %v1163_v30 }
 0x80c   :  { %v1683_v31 = vpop.eup %1682 }
 0x80d   :  { %827 = vrot.lane.b32.xlu0 %v1683_v31, %s1714_s26 }
 0x80e   :  { %v1685_v32 = vpop.eup %1684 }
 0x80f   :  { %v821_v33 = vadd.f32 1.0, %v1685_v32 }
 0x811   :  { %1686 = vrcp.f32 %v821_v33 }
 0x81e   :  { %v1687_v34 = vpop.eup %1686 }
 0x81f   :  { %825 = vrot.lane.b32.xlu1 %v1687_v34, %s1713_s21 }
 0x823   :  { %829 = vrot.lane.b32.xlu1 %v1687_v34, %s1712_s20 }
 0x87f   :  { %v828_v35 = vpop.permute.xlu0 %827 }
 0x880   :  { %v832_v52 = vmul.f32 %v1687_v34, %v828_v35 }
 0x891   :  { %v826_v36 = vpop.permute.xlu1 %825 }
 0x892   :  { %v831_v37 = vmul.f32 %v826_v36, %v726_v19  ;;  %v174_v19 = vadd.f32 %v2037_v54, %v1952_v22 }
 0x894   :  { %v833_v38 = vadd.f32 %v832_v52, %v831_v37 }
 0x895   :  { %v830_v42 = vpop.permute.xlu1 %829 }
 0x896   :  { %v2193_v39 = vsel %vm187_vm2, %v833_v38, 0.0 }
 0x897   :  { %1688 = vtanh.f32 %v2193_v39 }
 0x8a4   :  { %v1689_v40 = vpop.eup %1688 }
 0x8a5   :  { %v2196_v43 = vmul.f32 %v1689_v40, %v830_v42 }
 0x8a7   :  { %1581 = vmatmul.mubr.f32.vlgmr.msra.gmra.mxu1 %v2196_v43 }
 0x8a8   :  { %1634 = vmatprep.mubr.msk.f32.mxu1 %vm1711_vm0, %v1710_v0 }
 0x967   :  { %v921_v45 = vpop.f32.mrf.mxu1 }
 0x968   :  { %v925_v47 = vadd.f32 %v921_v45, %v169_v44 }
 0x969   :  { %v1582_v48 = vpop.f32.mrf.mxu1 }
 0x96a   :  { %v1164_v51 = vmul.f32 -1.442695, %v925_v47  ;;  %1690 = vtanh.f32 %v925_v47 }
 0x96c   :  { %1692 = vpow2.f32 %v1164_v51 }
 0x977   :  { %v1691_v60 = vpop.eup %1690 }
 0x978   :  { %935 = vrot.lane.b32.xlu1 %v1691_v60, %s1714_s26 }
 0x979   :  { %v1693_v61 = vpop.eup %1692 }
 0x97a   :  { %v929_v62 = vadd.f32 1.0, %v1693_v61 }
 0x97c   :  { %1694 = vrcp.f32 %v929_v62 }
 0x989   :  { %v1695_v1 = vpop.eup %1694 }
 0x98a   :  { %933 = vrot.lane.b32.xlu0 %v1695_v1, %s1713_s21 }
 0x98e   :  { %937 = vrot.lane.b32.xlu0 %v1695_v1, %s1712_s20 }
 0x9ea   :  { %v936_v10 = vpop.permute.xlu1 %935 }
 0x9eb   :  { %v940_v12 = vmul.f32 %v1695_v1, %v936_v10 }
 0x9fc   :  { %v934_v11 = vpop.permute.xlu0 %933 }
 0x9fd   :  { %v939_v13 = vmul.f32 %v934_v11, %v2193_v39 }
 0x9ff   :  { %v941_v14 = vadd.f32 %v940_v12, %v939_v13 }
 0xa00   :  { %v938_v17 = vpop.permute.xlu0 %937 }
 0xa01   :  { %v942_v15 = vsel %vm187_vm2, %v941_v14, 0.0 }
 0xa02   :  { %1696 = vtanh.f32 %v942_v15 }
 0xa0f   :  { %v1697_v16 = vpop.eup %1696 }
 0xa10   :  { %v944_v18 = vmul.f32 %v1697_v16, %v938_v17 }
 0xa12   :  { %1616 = vmatmul.mubr.f32.vlgmr.msra.gmra.mxu0 %v944_v18 }
 0xad2   :  { %v1029_v20 = vpop.f32.mrf.mxu0 }
 0xad3   :  { %v1033_v53 = vadd.f32 %v1029_v20, %v174_v19 }
 0xad4   :  { %v1617_v25 = vpop.f32.mrf.mxu0 }
 0xad5   :  { %v1165_v26 = vmul.f32 -1.442695, %v1033_v53  ;;  %1698 = vtanh.f32 %v1033_v53 }
 0xad7   :  { %1700 = vpow2.f32 %v1165_v26 }
 0xae2   :  { %v1699_v28 = vpop.eup %1698 }
 0xae3   :  { %1043 = vrot.lane.b32.xlu0 %v1699_v28, %s1714_s26 }
 0xae4   :  { %v1701_v29 = vpop.eup %1700 }
 0xae5   :  { %v1037_v30 = vadd.f32 1.0, %v1701_v29 }
 0xae7   :  { %1702 = vrcp.f32 %v1037_v30 }
 0xaf4   :  { %v1703_v31 = vpop.eup %1702 }
 0xaf5   :  { %1041 = vrot.lane.b32.xlu1 %v1703_v31, %s1713_s21 }
 0xaf9   :  { %1045 = vrot.lane.b32.xlu1 %v1703_v31, %s1712_s20 }
 0xb55   :  { %v1044_v32 = vpop.permute.xlu0 %1043 }
 0xb56   :  { %v1048_v22 = vmul.f32 %v1703_v31, %v1044_v32 }
 0xb67   :  { %v1042_v33 = vpop.permute.xlu1 %1041 }
 0xb68   :  { %v1047_v54 = vmul.f32 %v1042_v33, %v942_v15 }
 0xb6a   :  { %v1049_v34 = vadd.f32 %v1048_v22, %v1047_v54 }
 0xb6b   :  { %v1046_v52 = vpop.permute.xlu1 %1045 }
 0xb6c   :  { %v1050_v35 = vsel %vm187_vm2, %v1049_v34, 0.0 }
 0xb6d   :  { %1704 = vtanh.f32 %v1050_v35 }
 0xb7a   :  { %v1705_v36 = vpop.eup %1704 }
 0xb7b   :  { %v1052_v37 = vmul.f32 %v1705_v36, %v1046_v52 }
 0xb7d   :  { %1619 = vmatpush3.xpose.msra.mxu1 %v1052_v37 }
 0xb7e   :  { %1620 = vmatprep.subr.mxu1 %v1710_v0 }
 0xb81   :  { %1621 = vmatpush3.xpose.msra.mxu1 %v944_v18 }
 0xb82   :  { %1622 = vmatprep.subr.mxu1 %v1710_v0 }
 0xb85   :  { %1623 = vmatpush3.xpose.msra.mxu1 %v2196_v43 }
 0xb86   :  { %1624 = vmatprep.subr.mxu1 %v1710_v0 }
 0xb89   :  { %1625 = vmatpush3.xpose.msra.mxu1 %v2181_v24 }
 0xb8a   :  { %1626 = vmatprep.subr.mxu1 %v1710_v0 }
 0xb8d   :  { %1627 = vmatpush3.xpose.msra.mxu1 %v2137_v23  ;;  %v1066_v23 = vstv %s2306_s5 }
 0xb8e   :  { %1628 = vmatprep.subr.mxu1 %v1710_v0 }
 0xb91   :  { %1629 = vmatpush3.xpose.msra.mxu1 %v2093_v46 }
 0xb92   :  { %1630 = vmatprep.subr.mxu1 %v1710_v0 }
 0xb95   :  { %1631 = vmatpush3.xpose.msra.mxu1 %v2049_v27 }
 0xb96   :  { %1632 = vmatprep.subr.mxu1 %v1710_v0 }
 0xb99   :  { %1633 = vmatpush3.xpose.msra.mxu1 %v1992_v49 }
 0xb9c   :  { %1635 = vmatmul.mubr.f32.vlgmr.msra.gmra.mxu1 %v1056_v41 }
 0xc5c   :  { %v1133_v24 = vpop.f32.mrf.mxu1 }
 0xc5d   :  { %v1134_v38 = vadd.f32 %v1133_v24, %v1066_v23 }
 0xc5e   :  { %v1636_v46 = vpop.f32.mrf.mxu1 }
 0xc5f   :  { %v1166_v39 = vmul.f32 -1.442695, %v1134_v38 }
 0xc61   :  { %1706 = vpow2.f32 %v1166_v39 }
 0xc6e   :  { %v1707_v40 = vpop.eup %1706 }
 0xc6f   :  { %v1140_v27 = vadd.f32 1.0, %v1707_v40 }
 0xc71   :  { %1708 = vrcp.f32 %v1140_v27 }
 0xc7e   :  { %v1709_v0 = vpop.eup %1708 }
 0xc7f   :  { %1144 = vst.msk [vmem:[%s2307_s6] sm:$0x1] %vm1143_vm3, %v1709_v0 }

</bundles_post_ra>
